<compile_context>
chip_gen: v7x
topology: tpu7x:2x2x1
jax: 0.10.0
libtpu: 0.0.40
codegen_flags: <defaults>
</compile_context>

<pallas_src>
import functools

import jax
import jax.numpy as jnp
from jax import lax
from jax.experimental import pallas as pl
from jax.experimental.pallas import tpu as pltpu


def _conv3x3_acc(inp, w_ref, b_ref, m_m1, m_p1, W):
    """3x3 SAME conv on a channels-first, spatially-flattened image.

    inp   : (C, N) f32, inp[c, y*W + x] = image[c, y, x]
    w_ref : Ref (9, C, C), w_ref[ky*3 + kx][o, i] = weight[o, i, ky, kx]
    b_ref : Ref (C, 1)
    m_m1  : (1, N) f32, 1.0 where x-column >= 1      (valid outputs for dx=-1)
    m_p1  : (1, N) f32, 1.0 where x-column <= W - 2  (valid outputs for dx=+1)
    returns (C, N) f32
    """
    C, N = inp.shape
    P = W + 1  # zero halo wide enough for the most-negative tap offset (-W-1)

    # Single flat zero-padded row: the y out-of-bounds taps read exact zeros
    # from the halo, so no y-mask is ever needed.
    zp = jnp.zeros((C, P), inp.dtype)
    xe = jnp.concatenate([zp, inp, zp], axis=1)              # (C, N + 2P)

    per_dx = []
    for dxi, dx in enumerate((-1, 0, 1)):
        acc = None
        for dyi, dy in enumerate((-1, 0, 1)):
            k = dyi * 3 + dxi                                # == (dy+1)*3 + (dx+1)
            start = P + dy * W + dx                          # static offset
            tap = xe[:, start:start + N]                     # (C, N) shifted tap
            contrib = jnp.dot(w_ref[k], tap,
                              preferred_element_type=jnp.float32)
            acc = contrib if acc is None else acc + contrib
        per_dx.append(acc)

    o_m1, o_0, o_p1 = per_dx
    # The x-wrap contamination for a given dx only lands on that dx's invalid
    # output columns, so masking the summed per-dx contribution is exact.
    return o_0 + m_m1 * o_m1 + m_p1 * o_p1 + b_ref[...]


def _brm_kernel(x_ref, w1_ref, b1_ref, w2_ref, b2_ref, m_ref, out_ref, *, W):
    # x_ref  : (1, C, H*W)  one image, lane-dense flattened spatial
    # w*_ref : (9, C, C)    per-tap conv weights
    # b*_ref : (C, 1)       conv biases
    # m_ref  : (2, H*W)     precomputed x-boundary masks (resident)
    # out_ref: (1, C, H*W)
    x = x_ref[0]                                             # (C, N)
    m_m1 = m_ref[0:1, :]                                     # keep x-col >= 1
    m_p1 = m_ref[1:2, :]                                     # keep x-col <= W-2

    r = _conv3x3_acc(x, w1_ref, b1_ref, m_m1, m_p1, W)       # conv1 + bias
    r = jnp.maximum(r, 0.0)                                  # ReLU
    r = _conv3x3_acc(r, w2_ref, b2_ref, m_m1, m_p1, W)       # conv2 + bias

    out_ref[0] = (x + r).astype(out_ref.dtype)               # residual add


@jax.jit
def boundary_refine(x_nchw, w1, b1, w2, b2):
    """x_nchw: (B, C, H, W) f32. w*: (Cout, Cin, 3, 3) (PyTorch OIHW), b*: (C,)."""
    B, C, H, W = x_nchw.shape
    N = H * W

    # Free, layout-preserving reshape: spatial dims merge onto the lane axis.
    x_flat = x_nchw.reshape(B, C, N)

    # (O, I, 3, 3) -> (9, O, I) with k = ky*3 + kx.  Tiny, stays resident.
    def prep_w(w):
        return jnp.transpose(w, (2, 3, 0, 1)).reshape(9, C, C)

    w1m, w2m = prep_w(w1), prep_w(w2)
    b1c, b2c = b1.reshape(C, 1), b2.reshape(C, 1)

    # Hoisted x-boundary masks: row 0 -> valid outputs for dx=-1 taps,
    # row 1 -> valid outputs for dx=+1 taps.  Computed once on the host.
    xcol = jnp.arange(N, dtype=jnp.int32) % W
    masks = jnp.stack([xcol >= 1, xcol <= W - 2]).astype(jnp.float32)  # (2, N)

    flops = B * 2 * (2 * 9 * C * C * N)                    # two 3x3 convs
    bytes_accessed = 4 * (2 * B * C * N + 2 * 9 * C * C + 2 * C + 2 * N)

    out_flat = pl.pallas_call(
        functools.partial(_brm_kernel, W=W),
        out_shape=jax.ShapeDtypeStruct((B, C, N), jnp.float32),
        grid_spec=pltpu.PrefetchScalarGridSpec(
            num_scalar_prefetch=0,
            grid=(B,),
            in_specs=[
                pl.BlockSpec((1, C, N), lambda b: (b, 0, 0)),
                pl.BlockSpec((9, C, C), lambda b: (0, 0, 0)),
                pl.BlockSpec((C, 1), lambda b: (0, 0)),
                pl.BlockSpec((9, C, C), lambda b: (0, 0, 0)),
                pl.BlockSpec((C, 1), lambda b: (0, 0)),
                pl.BlockSpec((2, N), lambda b: (0, 0)),
            ],
            out_specs=pl.BlockSpec((1, C, N), lambda b: (b, 0, 0)),
        ),
        compiler_params=pltpu.CompilerParams(
            dimension_semantics=("parallel",),
            vmem_limit_bytes=64 * 1024 * 1024,
        ),
        cost_estimate=pl.CostEstimate(
            flops=flops, transcendentals=0, bytes_accessed=bytes_accessed),
    )(x_flat, w1m, b1c, w2m, b2c, masks)

    return out_flat.reshape(B, C, H, W)


def _reference(x, w1, b1, w2, b2):
    """Pure-JAX reference (PyTorch OIHW weight layout)."""
    def conv(z, w, b):
        y = lax.conv_general_dilated(
            z, w, window_strides=(1, 1), padding="SAME",
            dimension_numbers=("NCHW", "OIHW", "NCHW"))
        return y + b.reshape(1, -1, 1, 1)

    r = jnp.maximum(conv(x, w1, b1), 0.0)
    r = conv(r, w2, b2)
    return x + r


def _init_params(key, dim):
    """Deterministic init mirroring PyTorch Conv2d default uniform bounds."""
    k1, k2, k3, k4 = jax.random.split(key, 4)
    fan_in = dim * 3 * 3
    bound = 1.0 / jnp.sqrt(fan_in)
    w1 = jax.random.uniform(k1, (dim, dim, 3, 3), jnp.float32, -bound, bound)
    b1 = jax.random.uniform(k2, (dim,), jnp.float32, -bound, bound)
    w2 = jax.random.uniform(k3, (dim, dim, 3, 3), jnp.float32, -bound, bound)
    b2 = jax.random.uniform(k4, (dim,), jnp.float32, -bound, bound)
    return w1, b1, w2, b2


if __name__ == "__main__":
    key = jax.random.PRNGKey(0)
    kx, kp = jax.random.split(key)

    B, C, H, W = 2, 4, 16, 16                 # small, consistent with the module
    x = jax.random.normal(kx, (B, C, H, W), jnp.float32)
    w1, b1, w2, b2 = _init_params(kp, C)

    out = jax.block_until_ready(boundary_refine(x, w1, b1, w2, b2))
    ref = jax.block_until_ready(_reference(x, w1, b1, w2, b2))

    assert out.shape == (B, C, H, W)
    max_err = float(jnp.max(jnp.abs(out - ref)))
    assert jnp.allclose(out, ref, atol=1e-4, rtol=1e-4), max_err

    print("KERNEL_OK")
</pallas_src>

<mosaic_0001>
module attributes {stable_mosaic.version = 11 : i64} {
  func.func @_brm_kernel(%arg0: i32, %arg1: memref<1x4x256xf32, #tpu.memory_space<vmem>>, %arg2: memref<9x4x4xf32, #tpu.memory_space<vmem>>, %arg3: memref<4x1xf32, #tpu.memory_space<vmem>>, %arg4: memref<9x4x4xf32, #tpu.memory_space<vmem>>, %arg5: memref<4x1xf32, #tpu.memory_space<vmem>>, %arg6: memref<2x256xf32, #tpu.memory_space<vmem>>, %arg7: memref<1x4x256xf32, #tpu.memory_space<vmem>>) attributes {dimension_semantics = [#tpu.dimension_semantics<parallel>], iteration_bounds = array<i64: 2>, scalar_prefetch = 0 : i64, scratch_operands = 0 : i64, tpu.core_type = #tpu.core_type<tc>, window_params = [{transform_indices = @transform_0, window_bounds = array<i64: 1, 4, 256>}, {pipeline_mode = #tpu.pipeline_mode<synchronous>, transform_indices = @transform_1, window_bounds = array<i64: 9, 4, 4>}, {pipeline_mode = #tpu.pipeline_mode<synchronous>, transform_indices = @transform_2, window_bounds = array<i64: 4, 1>}, {pipeline_mode = #tpu.pipeline_mode<synchronous>, transform_indices = @transform_3, window_bounds = array<i64: 9, 4, 4>}, {pipeline_mode = #tpu.pipeline_mode<synchronous>, transform_indices = @transform_4, window_bounds = array<i64: 4, 1>}, {pipeline_mode = #tpu.pipeline_mode<synchronous>, transform_indices = @transform_5, window_bounds = array<i64: 2, 256>}, {transform_indices = @transform_6, window_bounds = array<i64: 1, 4, 256>}]} {
    %c0 = arith.constant 0 : index
    %c0_0 = arith.constant 0 : index
    %c0_1 = arith.constant 0 : index
    %0 = vector.load %arg1[%c0, %c0_0, %c0_1] : memref<1x4x256xf32, #tpu.memory_space<vmem>>, vector<1x4x256xf32>
    %1 = vector.shape_cast %0 : vector<1x4x256xf32> to vector<4x256xf32>
    %c0_2 = arith.constant 0 : index
    %c0_3 = arith.constant 0 : index
    %2 = vector.load %arg6[%c0_2, %c0_3] : memref<2x256xf32, #tpu.memory_space<vmem>>, vector<1x256xf32>
    %c1 = arith.constant 1 : index
    %c0_4 = arith.constant 0 : index
    %3 = vector.load %arg6[%c1, %c0_4] : memref<2x256xf32, #tpu.memory_space<vmem>>, vector<1x256xf32>
    %cst = arith.constant 0.000000e+00 : f32
    %4 = vector.broadcast %cst : f32 to vector<4x17xf32>
    %5 = tpu.concatenate %4, %1, %4 in 1 : vector<4x17xf32>, vector<4x256xf32>, vector<4x17xf32> -> vector<4x290xf32>
    %6 = vector.extract_strided_slice %5 {offsets = [0, 0], sizes = [4, 256], strides = [1, 1]} : vector<4x290xf32> to vector<4x256xf32>
    %c0_5 = arith.constant 0 : index
    %c0_6 = arith.constant 0 : index
    %c0_7 = arith.constant 0 : index
    %7 = vector.load %arg2[%c0_5, %c0_6, %c0_7] : memref<9x4x4xf32, #tpu.memory_space<vmem>>, vector<1x4x4xf32>
    %8 = vector.shape_cast %7 : vector<1x4x4xf32> to vector<4x4xf32>
    %cst_8 = arith.constant dense<0.000000e+00> : vector<4x256xf32>
    %9 = tpu.matmul %8, %6, %cst_8 {dimension_numbers = #tpu.dot_dimension_numbers<[1], [0], [0], [1], [0, 0, 1, 1], [], []>} : vector<4x4xf32>, vector<4x256xf32>, vector<4x256xf32> -> vector<4x256xf32>
    %10 = vector.extract_strided_slice %5 {offsets = [0, 16], sizes = [4, 256], strides = [1, 1]} : vector<4x290xf32> to vector<4x256xf32>
    %c3 = arith.constant 3 : index
    %c0_9 = arith.constant 0 : index
    %c0_10 = arith.constant 0 : index
    %11 = vector.load %arg2[%c3, %c0_9, %c0_10] : memref<9x4x4xf32, #tpu.memory_space<vmem>>, vector<1x4x4xf32>
    %12 = vector.shape_cast %11 : vector<1x4x4xf32> to vector<4x4xf32>
    %cst_11 = arith.constant dense<0.000000e+00> : vector<4x256xf32>
    %13 = tpu.matmul %12, %10, %cst_11 {dimension_numbers = #tpu.dot_dimension_numbers<[1], [0], [0], [1], [0, 0, 1, 1], [], []>} : vector<4x4xf32>, vector<4x256xf32>, vector<4x256xf32> -> vector<4x256xf32>
    %14 = arith.addf %9, %13 : vector<4x256xf32>
    %15 = vector.extract_strided_slice %5 {offsets = [0, 32], sizes = [4, 256], strides = [1, 1]} : vector<4x290xf32> to vector<4x256xf32>
    %c6 = arith.constant 6 : index
    %c0_12 = arith.constant 0 : index
    %c0_13 = arith.constant 0 : index
    %16 = vector.load %arg2[%c6, %c0_12, %c0_13] : memref<9x4x4xf32, #tpu.memory_space<vmem>>, vector<1x4x4xf32>
    %17 = vector.shape_cast %16 : vector<1x4x4xf32> to vector<4x4xf32>
    %cst_14 = arith.constant dense<0.000000e+00> : vector<4x256xf32>
    %18 = tpu.matmul %17, %15, %cst_14 {dimension_numbers = #tpu.dot_dimension_numbers<[1], [0], [0], [1], [0, 0, 1, 1], [], []>} : vector<4x4xf32>, vector<4x256xf32>, vector<4x256xf32> -> vector<4x256xf32>
    %19 = arith.addf %14, %18 : vector<4x256xf32>
    %20 = vector.extract_strided_slice %5 {offsets = [0, 1], sizes = [4, 256], strides = [1, 1]} : vector<4x290xf32> to vector<4x256xf32>
    %c1_15 = arith.constant 1 : index
    %c0_16 = arith.constant 0 : index
    %c0_17 = arith.constant 0 : index
    %21 = vector.load %arg2[%c1_15, %c0_16, %c0_17] : memref<9x4x4xf32, #tpu.memory_space<vmem>>, vector<1x4x4xf32>
    %22 = vector.shape_cast %21 : vector<1x4x4xf32> to vector<4x4xf32>
    %cst_18 = arith.constant dense<0.000000e+00> : vector<4x256xf32>
    %23 = tpu.matmul %22, %20, %cst_18 {dimension_numbers = #tpu.dot_dimension_numbers<[1], [0], [0], [1], [0, 0, 1, 1], [], []>} : vector<4x4xf32>, vector<4x256xf32>, vector<4x256xf32> -> vector<4x256xf32>
    %24 = vector.extract_strided_slice %5 {offsets = [0, 17], sizes = [4, 256], strides = [1, 1]} : vector<4x290xf32> to vector<4x256xf32>
    %c4 = arith.constant 4 : index
    %c0_19 = arith.constant 0 : index
    %c0_20 = arith.constant 0 : index
    %25 = vector.load %arg2[%c4, %c0_19, %c0_20] : memref<9x4x4xf32, #tpu.memory_space<vmem>>, vector<1x4x4xf32>
    %26 = vector.shape_cast %25 : vector<1x4x4xf32> to vector<4x4xf32>
    %cst_21 = arith.constant dense<0.000000e+00> : vector<4x256xf32>
    %27 = tpu.matmul %26, %24, %cst_21 {dimension_numbers = #tpu.dot_dimension_numbers<[1], [0], [0], [1], [0, 0, 1, 1], [], []>} : vector<4x4xf32>, vector<4x256xf32>, vector<4x256xf32> -> vector<4x256xf32>
    %28 = arith.addf %23, %27 : vector<4x256xf32>
    %29 = vector.extract_strided_slice %5 {offsets = [0, 33], sizes = [4, 256], strides = [1, 1]} : vector<4x290xf32> to vector<4x256xf32>
    %c7 = arith.constant 7 : index
    %c0_22 = arith.constant 0 : index
    %c0_23 = arith.constant 0 : index
    %30 = vector.load %arg2[%c7, %c0_22, %c0_23] : memref<9x4x4xf32, #tpu.memory_space<vmem>>, vector<1x4x4xf32>
    %31 = vector.shape_cast %30 : vector<1x4x4xf32> to vector<4x4xf32>
    %cst_24 = arith.constant dense<0.000000e+00> : vector<4x256xf32>
    %32 = tpu.matmul %31, %29, %cst_24 {dimension_numbers = #tpu.dot_dimension_numbers<[1], [0], [0], [1], [0, 0, 1, 1], [], []>} : vector<4x4xf32>, vector<4x256xf32>, vector<4x256xf32> -> vector<4x256xf32>
    %33 = arith.addf %28, %32 : vector<4x256xf32>
    %34 = vector.extract_strided_slice %5 {offsets = [0, 2], sizes = [4, 256], strides = [1, 1]} : vector<4x290xf32> to vector<4x256xf32>
    %c2 = arith.constant 2 : index
    %c0_25 = arith.constant 0 : index
    %c0_26 = arith.constant 0 : index
    %35 = vector.load %arg2[%c2, %c0_25, %c0_26] : memref<9x4x4xf32, #tpu.memory_space<vmem>>, vector<1x4x4xf32>
    %36 = vector.shape_cast %35 : vector<1x4x4xf32> to vector<4x4xf32>
    %cst_27 = arith.constant dense<0.000000e+00> : vector<4x256xf32>
    %37 = tpu.matmul %36, %34, %cst_27 {dimension_numbers = #tpu.dot_dimension_numbers<[1], [0], [0], [1], [0, 0, 1, 1], [], []>} : vector<4x4xf32>, vector<4x256xf32>, vector<4x256xf32> -> vector<4x256xf32>
    %38 = vector.extract_strided_slice %5 {offsets = [0, 18], sizes = [4, 256], strides = [1, 1]} : vector<4x290xf32> to vector<4x256xf32>
    %c5 = arith.constant 5 : index
    %c0_28 = arith.constant 0 : index
    %c0_29 = arith.constant 0 : index
    %39 = vector.load %arg2[%c5, %c0_28, %c0_29] : memref<9x4x4xf32, #tpu.memory_space<vmem>>, vector<1x4x4xf32>
    %40 = vector.shape_cast %39 : vector<1x4x4xf32> to vector<4x4xf32>
    %cst_30 = arith.constant dense<0.000000e+00> : vector<4x256xf32>
    %41 = tpu.matmul %40, %38, %cst_30 {dimension_numbers = #tpu.dot_dimension_numbers<[1], [0], [0], [1], [0, 0, 1, 1], [], []>} : vector<4x4xf32>, vector<4x256xf32>, vector<4x256xf32> -> vector<4x256xf32>
    %42 = arith.addf %37, %41 : vector<4x256xf32>
    %43 = vector.extract_strided_slice %5 {offsets = [0, 34], sizes = [4, 256], strides = [1, 1]} : vector<4x290xf32> to vector<4x256xf32>
    %c8 = arith.constant 8 : index
    %c0_31 = arith.constant 0 : index
    %c0_32 = arith.constant 0 : index
    %44 = vector.load %arg2[%c8, %c0_31, %c0_32] : memref<9x4x4xf32, #tpu.memory_space<vmem>>, vector<1x4x4xf32>
    %45 = vector.shape_cast %44 : vector<1x4x4xf32> to vector<4x4xf32>
    %cst_33 = arith.constant dense<0.000000e+00> : vector<4x256xf32>
    %46 = tpu.matmul %45, %43, %cst_33 {dimension_numbers = #tpu.dot_dimension_numbers<[1], [0], [0], [1], [0, 0, 1, 1], [], []>} : vector<4x4xf32>, vector<4x256xf32>, vector<4x256xf32> -> vector<4x256xf32>
    %47 = arith.addf %42, %46 : vector<4x256xf32>
    %48 = vector.broadcast %2 : vector<1x256xf32> to vector<4x256xf32>
    %49 = arith.mulf %48, %19 : vector<4x256xf32>
    %50 = arith.addf %33, %49 : vector<4x256xf32>
    %51 = vector.broadcast %3 : vector<1x256xf32> to vector<4x256xf32>
    %52 = arith.mulf %51, %47 : vector<4x256xf32>
    %53 = arith.addf %50, %52 : vector<4x256xf32>
    %c0_34 = arith.constant 0 : index
    %c0_35 = arith.constant 0 : index
    %54 = vector.load %arg3[%c0_34, %c0_35] : memref<4x1xf32, #tpu.memory_space<vmem>>, vector<4x1xf32>
    %55 = vector.broadcast %54 : vector<4x1xf32> to vector<4x256xf32>
    %56 = arith.addf %53, %55 : vector<4x256xf32>
    %cst_36 = arith.constant 0.000000e+00 : f32
    %57 = vector.broadcast %cst_36 : f32 to vector<4x256xf32>
    %58 = arith.maximumf %56, %57 : vector<4x256xf32>
    %cst_37 = arith.constant 0.000000e+00 : f32
    %59 = vector.broadcast %cst_37 : f32 to vector<4x17xf32>
    %60 = tpu.concatenate %59, %58, %59 in 1 : vector<4x17xf32>, vector<4x256xf32>, vector<4x17xf32> -> vector<4x290xf32>
    %61 = vector.extract_strided_slice %60 {offsets = [0, 0], sizes = [4, 256], strides = [1, 1]} : vector<4x290xf32> to vector<4x256xf32>
    %c0_38 = arith.constant 0 : index
    %c0_39 = arith.constant 0 : index
    %c0_40 = arith.constant 0 : index
    %62 = vector.load %arg4[%c0_38, %c0_39, %c0_40] : memref<9x4x4xf32, #tpu.memory_space<vmem>>, vector<1x4x4xf32>
    %63 = vector.shape_cast %62 : vector<1x4x4xf32> to vector<4x4xf32>
    %cst_41 = arith.constant dense<0.000000e+00> : vector<4x256xf32>
    %64 = tpu.matmul %63, %61, %cst_41 {dimension_numbers = #tpu.dot_dimension_numbers<[1], [0], [0], [1], [0, 0, 1, 1], [], []>} : vector<4x4xf32>, vector<4x256xf32>, vector<4x256xf32> -> vector<4x256xf32>
    %65 = vector.extract_strided_slice %60 {offsets = [0, 16], sizes = [4, 256], strides = [1, 1]} : vector<4x290xf32> to vector<4x256xf32>
    %c3_42 = arith.constant 3 : index
    %c0_43 = arith.constant 0 : index
    %c0_44 = arith.constant 0 : index
    %66 = vector.load %arg4[%c3_42, %c0_43, %c0_44] : memref<9x4x4xf32, #tpu.memory_space<vmem>>, vector<1x4x4xf32>
    %67 = vector.shape_cast %66 : vector<1x4x4xf32> to vector<4x4xf32>
    %cst_45 = arith.constant dense<0.000000e+00> : vector<4x256xf32>
    %68 = tpu.matmul %67, %65, %cst_45 {dimension_numbers = #tpu.dot_dimension_numbers<[1], [0], [0], [1], [0, 0, 1, 1], [], []>} : vector<4x4xf32>, vector<4x256xf32>, vector<4x256xf32> -> vector<4x256xf32>
    %69 = arith.addf %64, %68 : vector<4x256xf32>
    %70 = vector.extract_strided_slice %60 {offsets = [0, 32], sizes = [4, 256], strides = [1, 1]} : vector<4x290xf32> to vector<4x256xf32>
    %c6_46 = arith.constant 6 : index
    %c0_47 = arith.constant 0 : index
    %c0_48 = arith.constant 0 : index
    %71 = vector.load %arg4[%c6_46, %c0_47, %c0_48] : memref<9x4x4xf32, #tpu.memory_space<vmem>>, vector<1x4x4xf32>
    %72 = vector.shape_cast %71 : vector<1x4x4xf32> to vector<4x4xf32>
    %cst_49 = arith.constant dense<0.000000e+00> : vector<4x256xf32>
    %73 = tpu.matmul %72, %70, %cst_49 {dimension_numbers = #tpu.dot_dimension_numbers<[1], [0], [0], [1], [0, 0, 1, 1], [], []>} : vector<4x4xf32>, vector<4x256xf32>, vector<4x256xf32> -> vector<4x256xf32>
    %74 = arith.addf %69, %73 : vector<4x256xf32>
    %75 = vector.extract_strided_slice %60 {offsets = [0, 1], sizes = [4, 256], strides = [1, 1]} : vector<4x290xf32> to vector<4x256xf32>
    %c1_50 = arith.constant 1 : index
    %c0_51 = arith.constant 0 : index
    %c0_52 = arith.constant 0 : index
    %76 = vector.load %arg4[%c1_50, %c0_51, %c0_52] : memref<9x4x4xf32, #tpu.memory_space<vmem>>, vector<1x4x4xf32>
    %77 = vector.shape_cast %76 : vector<1x4x4xf32> to vector<4x4xf32>
    %cst_53 = arith.constant dense<0.000000e+00> : vector<4x256xf32>
    %78 = tpu.matmul %77, %75, %cst_53 {dimension_numbers = #tpu.dot_dimension_numbers<[1], [0], [0], [1], [0, 0, 1, 1], [], []>} : vector<4x4xf32>, vector<4x256xf32>, vector<4x256xf32> -> vector<4x256xf32>
    %79 = vector.extract_strided_slice %60 {offsets = [0, 17], sizes = [4, 256], strides = [1, 1]} : vector<4x290xf32> to vector<4x256xf32>
    %c4_54 = arith.constant 4 : index
    %c0_55 = arith.constant 0 : index
    %c0_56 = arith.constant 0 : index
    %80 = vector.load %arg4[%c4_54, %c0_55, %c0_56] : memref<9x4x4xf32, #tpu.memory_space<vmem>>, vector<1x4x4xf32>
    %81 = vector.shape_cast %80 : vector<1x4x4xf32> to vector<4x4xf32>
    %cst_57 = arith.constant dense<0.000000e+00> : vector<4x256xf32>
    %82 = tpu.matmul %81, %79, %cst_57 {dimension_numbers = #tpu.dot_dimension_numbers<[1], [0], [0], [1], [0, 0, 1, 1], [], []>} : vector<4x4xf32>, vector<4x256xf32>, vector<4x256xf32> -> vector<4x256xf32>
    %83 = arith.addf %78, %82 : vector<4x256xf32>
    %84 = vector.extract_strided_slice %60 {offsets = [0, 33], sizes = [4, 256], strides = [1, 1]} : vector<4x290xf32> to vector<4x256xf32>
    %c7_58 = arith.constant 7 : index
    %c0_59 = arith.constant 0 : index
    %c0_60 = arith.constant 0 : index
    %85 = vector.load %arg4[%c7_58, %c0_59, %c0_60] : memref<9x4x4xf32, #tpu.memory_space<vmem>>, vector<1x4x4xf32>
    %86 = vector.shape_cast %85 : vector<1x4x4xf32> to vector<4x4xf32>
    %cst_61 = arith.constant dense<0.000000e+00> : vector<4x256xf32>
    %87 = tpu.matmul %86, %84, %cst_61 {dimension_numbers = #tpu.dot_dimension_numbers<[1], [0], [0], [1], [0, 0, 1, 1], [], []>} : vector<4x4xf32>, vector<4x256xf32>, vector<4x256xf32> -> vector<4x256xf32>
    %88 = arith.addf %83, %87 : vector<4x256xf32>
    %89 = vector.extract_strided_slice %60 {offsets = [0, 2], sizes = [4, 256], strides = [1, 1]} : vector<4x290xf32> to vector<4x256xf32>
    %c2_62 = arith.constant 2 : index
    %c0_63 = arith.constant 0 : index
    %c0_64 = arith.constant 0 : index
    %90 = vector.load %arg4[%c2_62, %c0_63, %c0_64] : memref<9x4x4xf32, #tpu.memory_space<vmem>>, vector<1x4x4xf32>
    %91 = vector.shape_cast %90 : vector<1x4x4xf32> to vector<4x4xf32>
    %cst_65 = arith.constant dense<0.000000e+00> : vector<4x256xf32>
    %92 = tpu.matmul %91, %89, %cst_65 {dimension_numbers = #tpu.dot_dimension_numbers<[1], [0], [0], [1], [0, 0, 1, 1], [], []>} : vector<4x4xf32>, vector<4x256xf32>, vector<4x256xf32> -> vector<4x256xf32>
    %93 = vector.extract_strided_slice %60 {offsets = [0, 18], sizes = [4, 256], strides = [1, 1]} : vector<4x290xf32> to vector<4x256xf32>
    %c5_66 = arith.constant 5 : index
    %c0_67 = arith.constant 0 : index
    %c0_68 = arith.constant 0 : index
    %94 = vector.load %arg4[%c5_66, %c0_67, %c0_68] : memref<9x4x4xf32, #tpu.memory_space<vmem>>, vector<1x4x4xf32>
    %95 = vector.shape_cast %94 : vector<1x4x4xf32> to vector<4x4xf32>
    %cst_69 = arith.constant dense<0.000000e+00> : vector<4x256xf32>
    %96 = tpu.matmul %95, %93, %cst_69 {dimension_numbers = #tpu.dot_dimension_numbers<[1], [0], [0], [1], [0, 0, 1, 1], [], []>} : vector<4x4xf32>, vector<4x256xf32>, vector<4x256xf32> -> vector<4x256xf32>
    %97 = arith.addf %92, %96 : vector<4x256xf32>
    %98 = vector.extract_strided_slice %60 {offsets = [0, 34], sizes = [4, 256], strides = [1, 1]} : vector<4x290xf32> to vector<4x256xf32>
    %c8_70 = arith.constant 8 : index
    %c0_71 = arith.constant 0 : index
    %c0_72 = arith.constant 0 : index
    %99 = vector.load %arg4[%c8_70, %c0_71, %c0_72] : memref<9x4x4xf32, #tpu.memory_space<vmem>>, vector<1x4x4xf32>
    %100 = vector.shape_cast %99 : vector<1x4x4xf32> to vector<4x4xf32>
    %cst_73 = arith.constant dense<0.000000e+00> : vector<4x256xf32>
    %101 = tpu.matmul %100, %98, %cst_73 {dimension_numbers = #tpu.dot_dimension_numbers<[1], [0], [0], [1], [0, 0, 1, 1], [], []>} : vector<4x4xf32>, vector<4x256xf32>, vector<4x256xf32> -> vector<4x256xf32>
    %102 = arith.addf %97, %101 : vector<4x256xf32>
    %103 = vector.broadcast %2 : vector<1x256xf32> to vector<4x256xf32>
    %104 = arith.mulf %103, %74 : vector<4x256xf32>
    %105 = arith.addf %88, %104 : vector<4x256xf32>
    %106 = vector.broadcast %3 : vector<1x256xf32> to vector<4x256xf32>
    %107 = arith.mulf %106, %102 : vector<4x256xf32>
    %108 = arith.addf %105, %107 : vector<4x256xf32>
    %c0_74 = arith.constant 0 : index
    %c0_75 = arith.constant 0 : index
    %109 = vector.load %arg5[%c0_74, %c0_75] : memref<4x1xf32, #tpu.memory_space<vmem>>, vector<4x1xf32>
    %110 = vector.broadcast %109 : vector<4x1xf32> to vector<4x256xf32>
    %111 = arith.addf %108, %110 : vector<4x256xf32>
    %112 = arith.addf %1, %111 : vector<4x256xf32>
    %c0_76 = arith.constant 0 : index
    %c0_77 = arith.constant 0 : index
    %c0_78 = arith.constant 0 : index
    %113 = vector.load %arg7[%c0_76, %c0_77, %c0_78] : memref<1x4x256xf32, #tpu.memory_space<vmem>>, vector<1x4x256xf32>
    %114 = vector.shape_cast %113 : vector<1x4x256xf32> to vector<4x256xf32>
    %115 = vector.shape_cast %112 : vector<4x256xf32> to vector<1x4x256xf32>
    tpu.vector_store %arg7[%c0_76, %c0_77, %c0_78], %115 {strides = array<i32>} : memref<1x4x256xf32, #tpu.memory_space<vmem>>, vector<1x4x256xf32>,
    return
  }
  func.func @transform_0(%arg0: i32) -> (i32, i32, i32) {
    %c0_i32 = arith.constant 0 : i32
    %c0_i32_0 = arith.constant 0 : i32
    %c0_i32_1 = arith.constant 0 : i32
    return %arg0, %c0_i32, %c0_i32_0 : i32, i32, i32
  }
  func.func @transform_1(%arg0: i32) -> (i32, i32, i32) {
    %c0_i32 = arith.constant 0 : i32
    %c0_i32_0 = arith.constant 0 : i32
    %c0_i32_1 = arith.constant 0 : i32
    %c0_i32_2 = arith.constant 0 : i32
    return %c0_i32, %c0_i32_0, %c0_i32_1 : i32, i32, i32
  }
  func.func @transform_2(%arg0: i32) -> (i32, i32) {
    %c0_i32 = arith.constant 0 : i32
    %c0_i32_0 = arith.constant 0 : i32
    %c0_i32_1 = arith.constant 0 : i32
    return %c0_i32, %c0_i32_0 : i32, i32
  }
  func.func @transform_3(%arg0: i32) -> (i32, i32, i32) {
    %c0_i32 = arith.constant 0 : i32
    %c0_i32_0 = arith.constant 0 : i32
    %c0_i32_1 = arith.constant 0 : i32
    %c0_i32_2 = arith.constant 0 : i32
    return %c0_i32, %c0_i32_0, %c0_i32_1 : i32, i32, i32
  }
  func.func @transform_4(%arg0: i32) -> (i32, i32) {
    %c0_i32 = arith.constant 0 : i32
    %c0_i32_0 = arith.constant 0 : i32
    %c0_i32_1 = arith.constant 0 : i32
    return %c0_i32, %c0_i32_0 : i32, i32
  }
  func.func @transform_5(%arg0: i32) -> (i32, i32) {
    %c0_i32 = arith.constant 0 : i32
    %c0_i32_0 = arith.constant 0 : i32
    %c0_i32_1 = arith.constant 0 : i32
    return %c0_i32, %c0_i32_0 : i32, i32
  }
  func.func @transform_6(%arg0: i32) -> (i32, i32, i32) {
    %c0_i32 = arith.constant 0 : i32
    %c0_i32_0 = arith.constant 0 : i32
    %c0_i32_1 = arith.constant 0 : i32
    return %arg0, %c0_i32, %c0_i32_0 : i32, i32, i32
  }
}

</mosaic_0001>

<bundles_post_ra>
// kernel: boundary_refine.1
= control target key start
LH: loop header
LB: loop body
LE: loop exit
PB: predicated region body
PF: predicated region fallthrough
CT: control target
= control target key end

     0   :  { %11 = vsyncpa [#allocation3], 0  ;;  %s3154_s0 = inlined_call_operand.hbm [shape: f32[2,4,256], index: 0, kind: input, shape index: {}]   ;;  %s3155_s1 = inlined_call_operand.hbm [shape: f32[9,4,4], index: 1, kind: input, shape index: {}]   ;;  %s3156_s2 = inlined_call_operand.hbm [shape: f32[4,1], index: 2, kind: input, shape index: {}]   ;;  %s3157_s3 = inlined_call_operand.hbm [shape: f32[9,4,4], index: 3, kind: input, shape index: {}]   ;;  %s3158_s4 = inlined_call_operand.hbm [shape: f32[4,1], index: 4, kind: input, shape index: {}]   ;;  %s3159_s5 = inlined_call_operand.hbm [shape: f32[2,256], index: 5, kind: input, shape index: {}]   ;;  %s3160_s6 = inlined_call_operand.hbm [shape: f32[2,4,256], index: 6, kind: output, shape index: {}]  }
   0x1   :  { %13 = vsyncpa [#allocation3 + $0x1], 0 }
   0x2   :  { %14 = vsyncpa [#allocation6], 0 }
   0x3   :  { %15 = vsyncpa [#allocation9], 0 }
   0x4   :  { %16 = vsyncpa [#allocation12], 0 }
   0x5   :  { %17 = vsyncpa [#allocation4], 0 }
   0x6   :  { %19 = vsyncpa [#allocation4 + $0x1], 0  ;;  %s2670_s21 = smov 0   ;;  %s2672_s22 = smov 0  }
   0x7   :  { %s2674_s23 = smov 0   ;;  %s2676_s24 = smov 0  }
   0x8 LB: > { %s2615_s25 = smov [#allocation5]   ;;  %s2691_s27 = sadd.s32 4294967295, %s2613_s24   ;;  %s2613_s24 = sphi %s2676_s24, %s3185_s24   ;;  %s2609_s23 = sphi %s2674_s23, %s3184_s23   ;;  %s2605_s22 = sphi %s2672_s22, %s3183_s22   ;;  %s2601_s21 = sphi %s2670_s21, %s3182_s21  }
   0x9   : > { %s199_s26 = sshll.u32 %s2615_s25, 4  ;;  %p2150_p0 = scmp.ge.s32.totalorder %s2613_s24, 1  ;;  %s2696_s26 = int_to_ptr.vmem [resolvable:$true] %s199_s26 }
   0xa   : > { %p3161_p1 = scmp.eq.s32.totalorder %s2691_s27, 0  ;;  %p187_p2 = scmp.lt.s32.totalorder %s2613_s24, 3 }
   0xb   : > { %s2616_s29 = smov [#allocation8]   ;;  %s2617_s8 = smov [#allocation7]  }
   0xc   : > { %p2698_p3 = pnand %p2150_p0, %p187_p2  ;;  %s223_s30 = sshll.u32 %s2616_s29, 4  ;;  %s2711_s30 = int_to_ptr.vmem [resolvable:$true] %s223_s30 }
   0xd   : > { %s213_s9 = sshll.u32 %s2617_s8, 4  ;;  %s2365_s12 = scalar_lea.hbm %s3155_s1, 576  ;;  %s2713_s9 = int_to_ptr.vmem [resolvable:$true] %s213_s9 }
   0xe   : > { %s3164_s28 = scalar_select %p2698_p3, 1, 0 }
   0xf   : > { %p2277_p5 = pneg %p2698_p3  ;;  %p2366_p7 = scmp.ne.s32.totalorder %s3155_s1, %s2365_s12 }
  0x10   : > { %p2372_p11 = scmp.lt.u32.totalorder %s2365_s12, %s3155_s1 }
  0x11   : > { %p2707_p6 = pnand %p2277_p5, %p3161_p1 }
  0x13   : > { %p2723_p8 = pneg %p2707_p6 }
  0x15   : > { %p2368_p9 = pnand %p2723_p8, %p2366_p7 }
  0x17   : > { %p2369_p10 = pneg %p2368_p9 }
  0x19   : > { %p2374_p12 = pnand %p2372_p11, %p2369_p10 }
  0x1b   : > { %2377 = shalt.err (!%p2374_p12)
}
  0x1c   : > { %s2378_s18 = scalar_lea.vmem %s2696_s26, 576  ;;  %p2386_p5 = scmp.lt.s32.totalorder %s2696_s26, %s2696_s26 }
  0x1d   : > { %p2379_p13 = scmp.ne.s32.totalorder %s2696_s26, %s2378_s18  ;;  %p2387_p4 = scmp.lt.s32.totalorder %s2378_s18, %s2378_s18 }
  0x1f   : > { %p2381_p0 = pnand %p2379_p13, %p2723_p8  ;;  %p2388_p7 = por %p2387_p4, %p2386_p5 }
  0x21   : > { %p2382_p2 = pneg %p2381_p0 }
  0x23   : > { %p2389_p9 = pnand %p2388_p7, %p2382_p2 }
  0x25   : > { %2392 = shalt.err (!%p2389_p9)
}
  0x26   : > { %s2618_s19 = smov 64   ;;  %s2619_s20 = smov 4  }
  0x27   : > { %2280 = dma.hbm_to_vmem [thread:$0]  (!%p2707_p6), %s3155_s1, 576, %s2696_s26, [#allocation6], %s2618_s19, %s2618_s19, %s2619_s20  }
  0x28   : > { %s2393_s11 = scalar_lea.hbm %s3157_s3, 576 }
  0x29   : > { %p2394_p4 = scmp.ne.s32.totalorder %s3157_s3, %s2393_s11  ;;  %p2400_p12 = scmp.lt.u32.totalorder %s2393_s11, %s3157_s3 }
  0x2b   : > { %p2396_p10 = pnand %p2394_p4, %p2723_p8 }
  0x2d   : > { %p2397_p11 = pneg %p2396_p10 }
  0x2f   : > { %p2402_p13 = pnand %p2400_p12, %p2397_p11 }
  0x31   : > { %2405 = shalt.err (!%p2402_p13)
}
  0x32   : > { %s2406_s26 = scalar_lea.vmem %s2711_s30, 576  ;;  %p2414_p7 = scmp.lt.s32.totalorder %s2711_s30, %s2711_s30 }
  0x33   : > { %p2407_p0 = scmp.ne.s32.totalorder %s2711_s30, %s2406_s26  ;;  %p2415_p9 = scmp.lt.s32.totalorder %s2406_s26, %s2406_s26 }
  0x35   : > { %p2409_p2 = pnand %p2407_p0, %p2723_p8  ;;  %p2416_p4 = por %p2415_p9, %p2414_p7 }
  0x37   : > { %p2410_p5 = pneg %p2409_p2 }
  0x39   : > { %p2417_p10 = pnand %p2416_p4, %p2410_p5 }
  0x3b   : > { %2420 = shalt.err (!%p2417_p10)
}
  0x3c   : > { %2286 = dma.hbm_to_vmem [thread:$0]  (!%p2707_p6), %s3157_s3, 576, %s2711_s30, [#allocation9], %s2618_s19, %s2618_s19, %s2619_s20  }
  0x3d   : > { %s2421_s8 = scalar_lea.hbm %s3156_s2, 64 }
  0x3e   : > { %p2422_p11 = scmp.ne.s32.totalorder %s3156_s2, %s2421_s8  ;;  %p2428_p0 = scmp.lt.u32.totalorder %s2421_s8, %s3156_s2 }
  0x40   : > { %p2424_p12 = pnand %p2422_p11, %p2723_p8 }
  0x42   : > { %p2425_p13 = pneg %p2424_p12 }
  0x44   : > { %p2430_p2 = pnand %p2428_p0, %p2425_p13 }
  0x46   : > { %2433 = shalt.err (!%p2430_p2)
}
  0x47   : > { %s2434_s30 = scalar_lea.vmem %s2713_s9, 64  ;;  %p2442_p4 = scmp.lt.s32.totalorder %s2713_s9, %s2713_s9 }
  0x48   : > { %p2435_p5 = scmp.ne.s32.totalorder %s2713_s9, %s2434_s30  ;;  %p2443_p10 = scmp.lt.s32.totalorder %s2434_s30, %s2434_s30 }
  0x4a   : > { %p2437_p7 = pnand %p2435_p5, %p2723_p8  ;;  %p2444_p11 = por %p2443_p10, %p2442_p4 }
  0x4c   : > { %p2438_p9 = pneg %p2437_p7 }
  0x4e   : > { %p2445_p12 = pnand %p2444_p11, %p2438_p9 }
  0x50   : > { %2448 = shalt.err (!%p2445_p12)
}
  0x51   : > { %2283 = dma.hbm_to_vmem [thread:$0]  (!%p2707_p6), %s3156_s2, 64, %s2713_s9, [#allocation6]  }
  0x52   : > { %s2620_s14 = smov [#allocation10]   ;;  %s2621_s26 = smov [#allocation11]  }
  0x53   : > { %s237_s16 = sshll.u32 %s2620_s14, 4  ;;  %s248_s17 = sshll.u32 %s2621_s26, 4  ;;  %s238_s16 = int_to_ptr.vmem [resolvable:$true] %s237_s16  ;;  %s249_s17 = int_to_ptr.vmem [resolvable:$true] %s248_s17 }
  0x54   : > { %s2449_s29 = scalar_lea.hbm %s3158_s4, 64 }
  0x55   : > { %p2450_p13 = scmp.ne.s32.totalorder %s3158_s4, %s2449_s29  ;;  %p2456_p5 = scmp.lt.u32.totalorder %s2449_s29, %s3158_s4 }
  0x57   : > { %p2452_p0 = pnand %p2450_p13, %p2723_p8 }
  0x59   : > { %p2453_p2 = pneg %p2452_p0 }
  0x5b   : > { %p2458_p7 = pnand %p2456_p5, %p2453_p2 }
  0x5d   : > { %2461 = shalt.err (!%p2458_p7)
}
  0x5e   : > { %s2462_s9 = scalar_lea.vmem %s238_s16, 64  ;;  %p2470_p11 = scmp.lt.s32.totalorder %s238_s16, %s238_s16 }
  0x5f   : > { %p2463_p9 = scmp.ne.s32.totalorder %s238_s16, %s2462_s9  ;;  %p2471_p12 = scmp.lt.s32.totalorder %s2462_s9, %s2462_s9 }
  0x61   : > { %p2465_p4 = pnand %p2463_p9, %p2723_p8  ;;  %p2472_p1 = por %p2471_p12, %p2470_p11 }
  0x63   : > { %p2466_p10 = pneg %p2465_p4 }
  0x65   : > { %p2473_p3 = pnand %p2472_p1, %p2466_p10 }
  0x67   : > { %2476 = shalt.err (!%p2473_p3)
}
  0x68   : > { %2289 = dma.hbm_to_vmem [thread:$0]  (!%p2707_p6), %s3158_s4, 64, %s238_s16, [#allocation9]  }
  0x69   : > { %s2477_s14 = scalar_lea.hbm %s3159_s5, 64 }
  0x6a   : > { %p2478_p13 = scmp.ne.s32.totalorder %s3159_s5, %s2477_s14  ;;  %p2484_p3 = scmp.lt.u32.totalorder %s2477_s14, %s3159_s5 }
  0x6c   : > { %p2480_p0 = pnand %p2478_p13, %p2723_p8 }
  0x6e   : > { %p2481_p1 = pneg %p2480_p0 }
  0x70   : > { %p2486_p2 = pnand %p2484_p3, %p2481_p1 }
  0x72   : > { %2489 = shalt.err (!%p2486_p2)
}
  0x73   : > { %s2490_s8 = scalar_lea.vmem %s249_s17, 64  ;;  %p2498_p4 = scmp.lt.s32.totalorder %s249_s17, %s249_s17 }
  0x74   : > { %p2491_p5 = scmp.ne.s32.totalorder %s249_s17, %s2490_s8  ;;  %p2499_p10 = scmp.lt.s32.totalorder %s2490_s8, %s2490_s8 }
  0x76   : > { %p2493_p7 = pnand %p2491_p5, %p2723_p8  ;;  %p2500_p11 = por %p2499_p10, %p2498_p4 }
  0x78   : > { %p2494_p9 = pneg %p2493_p7 }
  0x7a   : > { %p2501_p12 = pnand %p2500_p11, %p2494_p9 }
  0x7c   : > { %2504 = shalt.err (!%p2501_p12)
}
  0x7d   : > { %2292 = dma.hbm_to_vmem [thread:$0]  (!%p2707_p6), %s3159_s5, 64, %s249_s17, [#allocation12]  }
  0x7e   : > { %s2149_s15 = sadd.s32 4294967294, %s2613_s24   ;;  %s2828_s7 = sadd.s32 1, %s2613_s24  }
  0x7f   : > { %s32_s11 = sadd.s32 1, %s2609_s23  ;;  %s29_s12 = ssub.s32 %s2613_s24, %s2828_s7 }
  0x80   : > { %p39_p8 = scmp.ne.s32.totalorder %s2609_s23, %s2605_s22  ;;  %p30_p13 = scmp.eq.s32.totalorder %s29_s12, 0 }
  0x81   : > { %p40_p0 = scmp.eq.s32.totalorder %s2613_s24, 0  ;;  %p45_p1 = scmp.ne.s32.totalorder %s2605_s22, %s2601_s21 }
  0x82   : > { %p174_p3 = scmp.eq.s32.totalorder %s2691_s27, 1  ;;  %p3167_p5 = scmp.eq.s32.totalorder %s2691_s27, 0 }
  0x83   : > { %s2840_s9 = scalar_select %p30_p13, %s2609_s23, %s32_s11  }
  0x84   : > { %p41_p2 = por %p40_p0, %p39_p8  ;;  %p2844_p7 = por %p3167_p5, %p45_p1 }
  0x85   : > { %p2848_p6 = por %p174_p3, %p39_p8  ;;  %p180_p9 = scmp.eq.s32.totalorder %s2149_s15, 1 }
  0x86   : > { %p2306_p4 = scmp.lt.s32.totalorder %s2613_s24, 2  ;;  %s259_s30 = sand.u32 1, %s2609_s23  }
  0x87   : > { %s3169_s17 = scalar_select %p2848_p6, 1, 0 }
  0x88   : > { %p2854_p10 = por %p180_p9, %p45_p1  ;;  %s2157_s20 = sshll.u32 %s259_s30, 3 }
  0x89   : > { %s2227_s14 = sshll.u32 %s2613_s24, 7  ;;  %s263_s29 = scalar_lea.vmem [#allocation2], %s2157_s20 }
  0x8a   : > { %s3170_s19 = scalar_select %p2854_p10, 1, 0 }
  0x8b   : > { %s2862_s25 = scalar_lea.hbm %s3154_s0, %s2227_s14  ;;  %s271_s8 = sshll.u32 %s263_s29, 4  ;;  %s2868_s8 = int_to_ptr.vmem [resolvable:$true] %s271_s8 }
  0x8c   : > { %p2864_p11 = pnand %p2306_p4, %p41_p2  ;;  %s260_s10 = scalar_lea.sflag [#allocation3], %s259_s30 }
  0x8d   : > { %s2505_s15 = scalar_lea.hbm %s2862_s25, 128  ;;  %s2510_s20 = scalar_lea.hbm %s3154_s0, 256 }
  0x8e   : > { %p2506_p12 = scmp.ne.s32.totalorder %s2862_s25, %s2505_s15  ;;  %p2507_p8 = pneg %p2864_p11 }
  0x8f   : > { %p2511_p1 = scmp.lt.u32.totalorder %s2862_s25, %s3154_s0  ;;  %p2512_p3 = scmp.lt.u32.totalorder %s2510_s20, %s2505_s15 }
  0x90   : > { %p2508_p13 = pnand %p2507_p8, %p2506_p12  ;;  %p2514_p5 = scmp.lt.u32.totalorder %s2505_s15, %s2862_s25 }
  0x91   : > { %p2513_p2 = por %p2512_p3, %p2511_p1 }
  0x92   : > { %p2509_p0 = pneg %p2508_p13 }
  0x93   : > { %p2515_p9 = por %p2514_p5, %p2513_p2 }
  0x95   : > { %p2516_p4 = pnand %p2515_p9, %p2509_p0 }
  0x97   : > { %2519 = shalt.err (!%p2516_p4)
}
  0x98   : > { %s2520_s30 = scalar_lea.vmem %s2868_s8, 128  ;;  %s2622_s18 = smov [#allocation2]  }
  0x99   : > { %p2521_p12 = scmp.ne.s32.totalorder %s2868_s8, %s2520_s30  ;;  %s2525_s29 = sshll.u32 %s2622_s18, 4  ;;  %s2526_s29 = int_to_ptr.vmem [resolvable:$false] %s2525_s29 }
  0x9a   : > { %s2527_s11 = scalar_lea.vmem %s2526_s29, 256  ;;  %p2528_p6 = scmp.lt.s32.totalorder %s2868_s8, %s2526_s29 }
  0x9b   : > { %p2523_p13 = pnand %p2521_p12, %p2507_p8  ;;  %p2529_p1 = scmp.lt.s32.totalorder %s2527_s11, %s2520_s30 }
  0x9d   : > { %p2524_p10 = pneg %p2523_p13  ;;  %p2530_p3 = por %p2529_p1, %p2528_p6 }
  0x9f   : > { %p2531_p2 = pnand %p2530_p3, %p2524_p10 }
  0xa1   : > { %2534 = shalt.err (!%p2531_p2)
}
  0xa2   : > { %2296 = dma.hbm_to_vmem [thread:$0]  (!%p2864_p11), %s2862_s25, 128, %s2868_s8, %s260_s10  }
  0xa3   : > { %p3172_p0 = scmp.ne.s32.totalorder %s3164_s28, 0 }
  0xa4   : > { %s2898_s15 = sand.u32 (!%p3172_p0), 1, %s2605_s22  }
  0xa5   : > { %280 = sbr.rel (%p3172_p0) target bundleno = 1198 (0x4ae), region = 44  ;;  %s2161_s12 = sshll.u32 (!%p3172_p0), %s2898_s15, 3 }
  0xa6   : > { %s283_s20 = scalar_lea.sflag (!%p3172_p0), [#allocation3], %s2898_s15  ;;  %s286_s14 = scalar_lea.vmem (!%p3172_p0), [#allocation2], %s2161_s12 }
  0xac   : > { %2580 = dma.done.wait (%p2844_p7), %s283_s20, 128  }
  0xad   : > { %2582 = vsyncadd (%p2844_p7), %s283_s20, 4294967168  ;;  %p3173_p6 = scmp.eq.s32.totalorder %s2691_s27, 0 }
  0xaf   : > { %2584 = dma.done.wait (%p3173_p6), [#allocation6], 640   ;;  %p3174_p10 = pmov %p3173_p6 }
  0xb0   : > { %p3175_p11 = pmov %p3173_p6 }
  0xb1   : > { %2586 = vsyncadd (%p3174_p10), [#allocation6], 4294966656 }
  0xb2   : > { %2588 = dma.done.wait (%p3175_p11), [#allocation9], 640   ;;  %p3176_p8 = pmov %p3173_p6 }
  0xb3   : > { %p3177_p5 = pmov %p3173_p6 }
  0xb4   : > { %2590 = vsyncadd (%p3176_p8), [#allocation9], 4294966656 }
  0xb5   : > { %2592 = dma.done.wait (%p3177_p5), [#allocation12], 64   ;;  %p3178_p9 = pmov %p3177_p5 }
  0xb6   : > { %v2920_v0 = vld [vmem:[%s286_s14] sm:$0xff]  ;;  %s2623_s28 = smov 17   ;;  %vm345_vm0 = vcmask 138240   ;;  %v2624_v2 = vmov 0.0   ;;  %s2625_s13 = smov 96   ;;  %v2633_v8 = vmov 0   ;;  %v1153_v59 = vlaneseq }
  0xb7   : > { %2594 = vsyncadd (%p3178_p9), [#allocation12], 4294967232  ;;  %341 = vrot.lane.b32.xlu0 %v2920_v0, %s2623_s28  ;;  %v340_v1 = vcombine.high %v2920_v0, %v2920_v0  ;;  %438 = vmatprep.mubr.f32.mxu0 %v2624_v2  ;;  %s2626_s25 = smov 112   ;;  %s2627_s8 = smov 111   ;;  %v1182_v9 = vld [vmem:[#allocation7] sm:$0xf] }
  0xb8   : > { %698 = vmatprep.mubr.f32.mxu1 %v2624_v2  ;;  %s2628_s16 = smov 127   ;;  %s2629_s10 = smov 110   ;;  %2363 = vset.pattern.permute.xlu0 %v2633_v8  ;;  %vm362_vm1 = vcmask 916480   ;;  %vm369_vm2 = vcmask 1043456   ;;  %v353_v17 = vld [vmem:[#allocation5 + $0xc] sm:$0xf] }
  0xb9   : > { %s2630_s26 = smov 126   ;;  %s2631_s30 = smov 95   ;;  %vm365_vm3 = vcmask 31744   ;;  %v351_v23 = vld [vmem:[#allocation5] sm:$0xf]  ;;  %vm531_vm4 = vcmask 785408  }
  0xba   : > { %s2632_s18 = smov 94   ;;  %vm624_vm5 = vcmask 908288   ;;  %v524_v31 = vld [vmem:[#allocation5 + $0x18] sm:$0xf]  ;;  %v617_v32 = vld [vmem:[#allocation5 + $0x10] sm:$0xf] }
  0xbb   : > { %343 = vrot.lane.b32.xlu0 %v340_v1, %s2623_s28  ;;  %vm893_vm6 = vcmask 900096   ;;  %v886_v37 = vld [vmem:[#allocation5 + $0x14] sm:$0xf]  ;;  %vm711_vm7 = vcmask 1039360   ;;  %v615_v42 = vld [vmem:[#allocation5 + $0x4] sm:$0xf] }
  0xbc   : > { %vm980_vm8 = vcmask 1031168   ;;  %v884_v47 = vld [vmem:[#allocation5 + $0x8] sm:$0xf]  ;;  %vm800_vm9 = vcmask 777216   ;;  %v793_v53 = vld [vmem:[#allocation5 + $0x1c] sm:$0xf] }
  0xbd   : > { %vm1069_vm10 = vcmask 769024   ;;  %v1062_v57 = vld [vmem:[#allocation5 + $0x20] sm:$0xf]  ;;  %v1154_v62 = vshrl.u32 %v1153_v59, 7  ;;  %s2228_s29 = sshll.u32 %s2691_s27, 7  ;;  %s334_s11 = scalar_lea.vmem [#allocation13], %s2161_s12 }
  0xbe   : > { %v336_v1 = vld [vmem:[#allocation11] ss:$2 sm:$0x3]  ;;  %s2031_s20 = sshll.u32 %s334_s11, 4  ;;  %p3179_p4 = scmp.ne.s32.totalorder %s3169_s17, 0  ;;  %s3112_s20 = int_to_ptr.vmem [resolvable:$true] %s2031_s20 }
  0xbf   : > { %v1155_v63 = vsub.s32 0, %v1154_v62  ;;  %s2634_s27 = smov [#allocation13]  }
  0xc0   : > { %s2539_s12 = sshll.u32 %s2634_s27, 4  ;;  %s2540_s12 = int_to_ptr.vmem [resolvable:$false] %s2539_s12 }
  0xc1   : > { %p2542_p1 = scmp.lt.s32.totalorder %s3112_s20, %s2540_s12 }
 0x129   : > { %v342_v3 = vpop.permute.xlu0 %341 }
 0x12a   : > { %v349_v4 = vsel %vm345_vm0, 0.0, %v342_v3 }
 0x12b   : > { %525 = vrot.lane.b32.xlu1 %v349_v4, %s2625_s13  ;;  %356 = vrot.lane.b32.xlu0 %v349_v4, %s2626_s25 }
 0x12d   : > { %v344_v5 = vpop.permute.xlu0 %343 }
 0x12e   : > { %v346_v6 = vsel %vm345_vm0, %v342_v3, %v344_v5  ;;  %v350_v7 = vsel %vm345_vm0, %v344_v5, 0.0  ;;  %v1159_v3 = vsub.s32 1, %v1154_v62 }
 0x12f   : > { %618 = vrot.lane.b32.xlu0 %v349_v4, %s2627_s8  ;;  %358 = vrot.lane.b32.xlu1 %v346_v6, %s2626_s25 }
 0x130   : > { %v3010_v5 = vrot.slane %v336_v1, %v1159_v3 }
 0x133   : > { %705 = vrot.lane.b32.xlu0 %v349_v4, %s2628_s16  ;;  %360 = vrot.lane.b32.xlu1 %v350_v7, %s2626_s25 }
 0x137   : > { %529 = vrot.lane.b32.xlu0 %v350_v7, %s2625_s13  ;;  %887 = vrot.lane.b32.xlu1 %v349_v4, %s2629_s10 }
 0x13b   : > { %620 = vrot.lane.b32.xlu0 %v346_v6, %s2627_s8  ;;  %974 = vrot.lane.b32.xlu1 %v349_v4, %s2630_s26 }
 0x13f   : > { %889 = vrot.lane.b32.xlu0 %v346_v6, %s2629_s10  ;;  %527 = vrot.lane.b32.xlu1 %v346_v6, %s2625_s13 }
 0x143   : > { %707 = vrot.lane.b32.xlu0 %v346_v6, %s2628_s16  ;;  %622 = vrot.lane.b32.xlu1 %v350_v7, %s2627_s8 }
 0x147   : > { %976 = vrot.lane.b32.xlu0 %v346_v6, %s2630_s26  ;;  %891 = vrot.lane.b32.xlu1 %v350_v7, %s2629_s10 }
 0x14b   : > { %796 = vrot.lane.b32.xlu0 %v346_v6, %s2631_s30  ;;  %709 = vrot.lane.b32.xlu1 %v350_v7, %s2628_s16 }
 0x14f   : > { %1065 = vrot.lane.b32.xlu0 %v346_v6, %s2632_s18  ;;  %978 = vrot.lane.b32.xlu1 %v350_v7, %s2630_s26 }
 0x153   : > { %794 = vrot.lane.b32.xlu0 %v349_v4, %s2631_s30  ;;  %798 = vrot.lane.b32.xlu1 %v350_v7, %s2631_s30 }
 0x157   : > { %1067 = vrot.lane.b32.xlu1 %v350_v7, %s2632_s18  ;;  %1185 = vperm.xlu0 %2363, %v1182_v9  }
 0x15b   : > { %1063 = vrot.lane.b32.xlu1 %v349_v4, %s2632_s18 }
 0x19d   : > { %v526_v10 = vpop.permute.xlu1 %525  ;;  %v357_v11 = vpop.permute.xlu0 %356 }
 0x1a1   : > { %v359_v12 = vpop.permute.xlu1 %358  ;;  %v619_v13 = vpop.permute.xlu0 %618 }
 0x1a2   : > { %v363_v18 = vsel %vm362_vm1, %v357_v11, %v359_v12  ;;  %v338_v11 = vld [vmem:[#allocation11 + $0x1] ss:$2 sm:$0x3] }
 0x1a5   : > { %v361_v14 = vpop.permute.xlu1 %360  ;;  %v706_v15 = vpop.permute.xlu0 %705 }
 0x1a6   : > { %v364_v16 = vsel %vm362_vm1, %v359_v12, %v361_v14  ;;  %v3016_v14 = vrot.slane %v338_v11, %v1159_v3 }
 0x1a7   : > { %2168 = vmatprep.subr.msk.mxu0 %vm369_vm2, %v364_v16 }
 0x1a8   : > { %2169 = vmatpush1.msk.msra.mxu0 %vm369_vm2, %v363_v18 }
 0x1a9   : > { %v888_v19 = vpop.permute.xlu1 %887  ;;  %2170 = vmatmul.mubr.msk.f32.vlgmr.msra.gmra.mrb[0].mxu0 %vm365_vm3, %v353_v17  ;;  %2171 = vmatprep.subr.msk.mxu0 %vm369_vm2, %v346_v6  ;;  %v530_v20 = vpop.permute.xlu0 %529 }
 0x1aa   : > { %2172 = vmatpush1.msk.msra.mxu0 %vm369_vm2, %v349_v4  ;;  %516 = vmatprep.mubr.f32.mxu0 %v2624_v2  ;;  %v3008_v4 = vrot.slane %v336_v1, %v1155_v63 }
 0x1ad   : > { %v975_v21 = vpop.permute.xlu1 %974  ;;  %v621_v22 = vpop.permute.xlu0 %620 }
 0x1ae   : > { %v625_v33 = vsel %vm624_vm5, %v619_v13, %v621_v22  ;;  %v3014_v13 = vrot.slane %v338_v11, %v1155_v63  ;;  %v1463_v63 = vld [vmem:[#allocation8 + $0x4] sm:$0xf] }
 0x1b1   : > { %v528_v24 = vpop.permute.xlu1 %527  ;;  %2173 = vmatmul.mubr.msk.f32.vlgmr.msra.gmra.mrb[0].mxu0 %vm365_vm3, %v351_v23  ;;  %v890_v25 = vpop.permute.xlu0 %889 }
 0x1b2   : > { %v532_v26 = vsel %vm531_vm4, %v526_v10, %v528_v24  ;;  %v533_v27 = vsel %vm531_vm4, %v528_v24, %v530_v20  ;;  %605 = vmatprep.mubr.f32.mxu0 %v2624_v2  ;;  %v894_v38 = vsel %vm893_vm6, %v888_v19, %v890_v25 }
 0x1b3   : > { %2174 = vmatprep.subr.msk.mxu0 %vm369_vm2, %v533_v27 }
 0x1b4   : > { %2175 = vmatpush1.msk.msra.mxu0 %vm369_vm2, %v532_v26 }
 0x1b5   : > { %v623_v28 = vpop.permute.xlu1 %622  ;;  %v708_v29 = vpop.permute.xlu0 %707 }
 0x1b6   : > { %v626_v30 = vsel %vm624_vm5, %v621_v22, %v623_v28  ;;  %v712_v43 = vsel %vm711_vm7, %v706_v15, %v708_v29 }
 0x1b7   : > { %2177 = vmatprep.subr.msk.mxu1 %vm369_vm2, %v626_v30 }
 0x1b8   : > { %2178 = vmatpush1.msk.msra.mxu1 %vm369_vm2, %v625_v33 }
 0x1b9   : > { %v892_v34 = vpop.permute.xlu1 %891  ;;  %2176 = vmatmul.mubr.msk.f32.vlgmr.msra.gmra.mrb[0].mxu0 %vm365_vm3, %v524_v31  ;;  %2179 = vmatmul.mubr.msk.f32.vlgmr.msra.gmra.mrb[0].mxu1 %vm365_vm3, %v617_v32  ;;  %v977_v35 = vpop.permute.xlu0 %976  ;;  %v2002_v31 = vld [vmem:[#allocation10] sm:$0xf] }
 0x1ba   : > { %v895_v36 = vsel %vm893_vm6, %v890_v25, %v892_v34  ;;  %967 = vmatprep.mubr.f32.mxu0 %v2624_v2  ;;  %785 = vmatprep.mubr.f32.mxu1 %v2624_v2  ;;  %v981_v48 = vsel %vm980_vm8, %v975_v21, %v977_v35 }
 0x1bb   : > { %2186 = vmatprep.subr.msk.mxu0 %vm369_vm2, %v895_v36 }
 0x1bc   : > { %2187 = vmatpush1.msk.msra.mxu0 %vm369_vm2, %v894_v38  ;;  %v1205_v38 = vld [vmem:[#allocation8 + $0xc] sm:$0xf] }
 0x1bd   : > { %v710_v39 = vpop.permute.xlu1 %709  ;;  %v797_v40 = vpop.permute.xlu0 %796  ;;  %2188 = vmatmul.mubr.msk.f32.vlgmr.msra.gmra.mrb[2].mxu0 %vm365_vm3, %v886_v37 }
 0x1be   : > { %v713_v41 = vsel %vm711_vm7, %v708_v29, %v710_v39  ;;  %1054 = vmatprep.mubr.f32.mxu0 %v2624_v2 }
 0x1bf   : > { %2180 = vmatprep.subr.msk.mxu1 %vm369_vm2, %v713_v41 }
 0x1c0   : > { %2181 = vmatpush1.msk.msra.mxu1 %vm369_vm2, %v712_v43  ;;  %v1203_v43 = vld [vmem:[#allocation8] sm:$0xf] }
 0x1c1   : > { %v979_v44 = vpop.permute.xlu1 %978  ;;  %2182 = vmatmul.mubr.msk.f32.vlgmr.msra.gmra.mrb[0].mxu1 %vm365_vm3, %v615_v42  ;;  %v1066_v45 = vpop.permute.xlu0 %1065 }
 0x1c2   : > { %v982_v46 = vsel %vm980_vm8, %v977_v35, %v979_v44  ;;  %874 = vmatprep.mubr.f32.mxu1 %v2624_v2 }
 0x1c3   : > { %2189 = vmatprep.subr.msk.mxu0 %vm369_vm2, %v982_v46 }
 0x1c4   : > { %2190 = vmatpush1.msk.msra.mxu0 %vm369_vm2, %v981_v48 }
 0x1c5   : > { %v799_v49 = vpop.permute.xlu1 %798  ;;  %v795_v50 = vpop.permute.xlu0 %794  ;;  %2191 = vmatmul.mubr.msk.f32.vlgmr.msra.gmra.mrb[2].mxu0 %vm365_vm3, %v884_v47 }
 0x1c6   : > { %v802_v51 = vsel %vm800_vm9, %v797_v40, %v799_v49  ;;  %v801_v52 = vsel %vm800_vm9, %v795_v50, %v797_v40  ;;  %1143 = vmatprep.mubr.f32.mxu0 %v2624_v2 }
 0x1c7   : > { %2183 = vmatprep.subr.msk.mxu1 %vm369_vm2, %v802_v51 }
 0x1c8   : > { %2184 = vmatpush1.msk.msra.mxu1 %vm369_vm2, %v801_v52  ;;  %v1373_v52 = vld [vmem:[#allocation8 + $0x18] sm:$0xf] }
 0x1c9   : > { %v1068_v54 = vpop.permute.xlu1 %1067  ;;  %2185 = vmatmul.mubr.msk.f32.vlgmr.msra.gmra.mrb[0].mxu1 %vm365_vm3, %v793_v53  ;;  %v1465_v53 = vld [vmem:[#allocation8 + $0x10] sm:$0xf] }
 0x1ca   : > { %v1071_v55 = vsel %vm1069_vm10, %v1066_v45, %v1068_v54  ;;  %1287 = vmatprep.mubr.f32.mxu1 %v2624_v2 }
 0x1cb   : > { %2192 = vmatprep.subr.msk.mxu0 %vm369_vm2, %v1071_v55 }
 0x1cd   : > { %v1064_v56 = vpop.permute.xlu1 %1063 }
 0x1ce   : > { %v1070_v58 = vsel %vm1069_vm10, %v1064_v56, %v1066_v45 }
 0x1cf   : > { %2193 = vmatpush1.msk.msra.mxu0 %vm369_vm2, %v1070_v58  ;;  %v1731_v58 = vld [vmem:[#allocation8 + $0x14] sm:$0xf] }
 0x1d0   : > { %2194 = vmatmul.mubr.msk.f32.vlgmr.msra.gmra.mrb[2].mxu0 %vm365_vm3, %v1062_v57 }
 0x1d1   : > { %1545 = vmatprep.mubr.f32.mxu0 %v2624_v2 }
 0x1d6   : > { %v1186_v19 = vpop.permute.xlu0 %1185 }
 0x28c   : > { %v607_v60 = vpop.f32.mrb[0].mxu0 }
 0x28d   : > { %v609_v61 = vpop.f32.mrb[1].mxu0  ;;  %v1163_v6 = vmul.f32 %v3008_v4, %v607_v60 }
 0x28e   : > { %v1164_v7 = vmul.f32 %v3010_v5, %v609_v61 }
 0x29c   : > { %v876_v8 = vpop.f32.mrb[0].mxu1 }
 0x29d   : > { %v1165_v9 = vadd.f32 %v1163_v6, %v876_v8  ;;  %v878_v10 = vpop.f32.mrb[1].mxu1  ;;  %v1729_v8 = vld [vmem:[#allocation8 + $0x8] sm:$0xf] }
 0x29e   : > { %v1166_v12 = vadd.f32 %v1164_v7, %v878_v10 }
 0x2a3   : > { %v1145_v15 = vpop.f32.mrb[2].mxu0 }
 0x2a4   : > { %v1178_v16 = vmul.f32 %v3014_v13, %v1145_v15  ;;  %v1147_v17 = vpop.f32.mrb[3].mxu0 }
 0x2a5   : > { %v1179_v18 = vmul.f32 %v3016_v14, %v1147_v17 }
 0x2a6   : > { %v1180_v20 = vadd.f32 %v1178_v16, %v1165_v9 }
 0x2a7   : > { %v1181_v21 = vadd.f32 %v1179_v18, %v1166_v12 }
 0x2a8   : > { %v1188_v22 = vadd.f32 %v1186_v19, %v1180_v20  ;;  %v1905_v20 = vld [vmem:[#allocation8 + $0x20] sm:$0xf] }
 0x2a9   : > { %v1189_v23 = vadd.f32 %v1186_v19, %v1181_v21  ;;  %v1639_v19 = vld [vmem:[#allocation8 + $0x1c] sm:$0xf] }
 0x2aa   : > { %v1190_v24 = vmax.f32 %v1188_v22, 0.0 }
 0x2ab   : > { %v1191_v25 = vmax.f32 %v1189_v23, 0.0 }
 0x2ac   : > { %1194 = vrot.lane.b32.xlu1 %v1190_v24, %s2623_s28 }
 0x2b0   : > { %1196 = vrot.lane.b32.xlu1 %v1191_v25, %s2623_s28 }
 0x31e   : > { %v1195_v26 = vpop.permute.xlu1 %1194 }
 0x31f   : > { %v1201_v27 = vsel %vm345_vm0, 0.0, %v1195_v26 }
 0x320   : > { %1374 = vrot.lane.b32.xlu1 %v1201_v27, %s2625_s13  ;;  %1208 = vrot.lane.b32.xlu0 %v1201_v27, %s2626_s25 }
 0x322   : > { %v1197_v28 = vpop.permute.xlu1 %1196 }
 0x323   : > { %v1198_v29 = vsel %vm345_vm0, %v1195_v26, %v1197_v28  ;;  %v1202_v30 = vsel %vm345_vm0, %v1197_v28, 0.0 }
 0x324   : > { %1212 = vrot.lane.b32.xlu1 %v1202_v30, %s2626_s25  ;;  %1210 = vrot.lane.b32.xlu0 %v1198_v29, %s2626_s25  ;;  %s2017_s25 = scalar_lea.sflag [#allocation4], %s2898_s15 }
 0x328   : > { %1732 = vrot.lane.b32.xlu1 %v1201_v27, %s2629_s10  ;;  %1466 = vrot.lane.b32.xlu0 %v1201_v27, %s2627_s8 }
 0x32c   : > { %1818 = vrot.lane.b32.xlu1 %v1201_v27, %s2630_s26  ;;  %1552 = vrot.lane.b32.xlu0 %v1201_v27, %s2628_s16 }
 0x330   : > { %1376 = vrot.lane.b32.xlu1 %v1198_v29, %s2625_s13  ;;  %1378 = vrot.lane.b32.xlu0 %v1202_v30, %s2625_s13  ;;  %s3110_s13 = scalar_lea.hbm %s3160_s6, %s2228_s29 }
 0x334   : > { %1470 = vrot.lane.b32.xlu1 %v1202_v30, %s2627_s8  ;;  %1468 = vrot.lane.b32.xlu0 %v1198_v29, %s2627_s8  ;;  %s2535_s8 = scalar_lea.vmem %s3112_s20, 128 }
 0x335   : > { %p2536_p7 = scmp.ne.s32.totalorder %s3112_s20, %s2535_s8 }
 0x337   : > { %p2537_p12 = pnand %p2536_p7, %p3179_p4 }
 0x338   : > { %1736 = vrot.lane.b32.xlu1 %v1202_v30, %s2629_s10  ;;  %1734 = vrot.lane.b32.xlu0 %v1198_v29, %s2629_s10 }
 0x339   : > { %p2538_p13 = pneg %p2537_p12 }
 0x33c   : > { %1556 = vrot.lane.b32.xlu1 %v1202_v30, %s2628_s16  ;;  %1554 = vrot.lane.b32.xlu0 %v1198_v29, %s2628_s16  ;;  %s2541_s16 = scalar_lea.vmem %s2540_s12, 256 }
 0x33d   : > { %p2543_p3 = scmp.lt.s32.totalorder %s2541_s16, %s2535_s8 }
 0x33f   : > { %p2544_p2 = por %p2543_p3, %p2542_p1 }
 0x340   : > { %1822 = vrot.lane.b32.xlu1 %v1202_v30, %s2630_s26  ;;  %1820 = vrot.lane.b32.xlu0 %v1198_v29, %s2630_s26 }
 0x341   : > { %p2545_p0 = pnand %p2544_p2, %p2538_p13 }
 0x344   : > { %1644 = vrot.lane.b32.xlu1 %v1202_v30, %s2631_s30  ;;  %1642 = vrot.lane.b32.xlu0 %v1198_v29, %s2631_s30 }
 0x348   : > { %1910 = vrot.lane.b32.xlu1 %v1202_v30, %s2632_s18  ;;  %1908 = vrot.lane.b32.xlu0 %v1198_v29, %s2632_s18 }
 0x34c   : > { %1906 = vrot.lane.b32.xlu1 %v1201_v27, %s2632_s18  ;;  %1640 = vrot.lane.b32.xlu0 %v1201_v27, %s2631_s30 }
 0x350   : > { %2005 = vperm.xlu0 %2363, %v2002_v31  }
 0x392   : > { %v1209_v32 = vpop.permute.xlu0 %1208  ;;  %v1375_v33 = vpop.permute.xlu1 %1374 }
 0x396   : > { %v1211_v34 = vpop.permute.xlu0 %1210  ;;  %v1213_v35 = vpop.permute.xlu1 %1212 }
 0x397   : > { %v1214_v36 = vsel %vm362_vm1, %v1209_v32, %v1211_v34  ;;  %v1215_v37 = vsel %vm362_vm1, %v1211_v34, %v1213_v35 }
 0x398   : > { %2195 = vmatprep.subr.msk.mxu1 %vm369_vm2, %v1215_v37 }
 0x399   : > { %2196 = vmatpush1.msk.msra.mxu1 %vm369_vm2, %v1214_v36 }
 0x39a   : > { %v1467_v39 = vpop.permute.xlu0 %1466  ;;  %2197 = vmatmul.mubr.msk.f32.vlgmr.msra.gmra.mrb[2].mxu1 %vm365_vm3, %v1205_v38  ;;  %2198 = vmatprep.subr.msk.mxu1 %vm369_vm2, %v1198_v29  ;;  %v1733_v40 = vpop.permute.xlu1 %1732 }
 0x39b   : > { %2199 = vmatpush1.msk.msra.mxu1 %vm369_vm2, %v1201_v27  ;;  %1365 = vmatprep.mubr.f32.mxu1 %v2624_v2 }
 0x39e   : > { %v1553_v41 = vpop.permute.xlu0 %1552  ;;  %v1819_v42 = vpop.permute.xlu1 %1818 }
 0x3a2   : > { %v1379_v44 = vpop.permute.xlu0 %1378  ;;  %2200 = vmatmul.mubr.msk.f32.vlgmr.msra.gmra.mrb[2].mxu1 %vm365_vm3, %v1203_v43  ;;  %v1377_v45 = vpop.permute.xlu1 %1376 }
 0x3a3   : > { %v1380_v46 = vsel %vm531_vm4, %v1375_v33, %v1377_v45  ;;  %v1381_v47 = vsel %vm531_vm4, %v1377_v45, %v1379_v44  ;;  %1453 = vmatprep.mubr.f32.mxu1 %v2624_v2 }
 0x3a4   : > { %2201 = vmatprep.subr.msk.mxu1 %vm369_vm2, %v1381_v47 }
 0x3a5   : > { %2202 = vmatpush1.msk.msra.mxu1 %vm369_vm2, %v1380_v46 }
 0x3a6   : > { %v1469_v48 = vpop.permute.xlu0 %1468  ;;  %v1471_v49 = vpop.permute.xlu1 %1470 }
 0x3a7   : > { %v1472_v50 = vsel %vm624_vm5, %v1467_v39, %v1469_v48  ;;  %v1473_v51 = vsel %vm624_vm5, %v1469_v48, %v1471_v49 }
 0x3a8   : > { %2204 = vmatprep.subr.msk.mxu0 %vm369_vm2, %v1473_v51 }
 0x3a9   : > { %2205 = vmatpush1.msk.msra.mxu0 %vm369_vm2, %v1472_v50 }
 0x3aa   : > { %v1735_v54 = vpop.permute.xlu0 %1734  ;;  %2203 = vmatmul.mubr.msk.f32.vlgmr.msra.gmra.mrb[2].mxu1 %vm365_vm3, %v1373_v52  ;;  %v1737_v55 = vpop.permute.xlu1 %1736  ;;  %2206 = vmatmul.mubr.msk.f32.vlgmr.msra.gmra.mrb[4].mxu0 %vm365_vm3, %v1465_v53 }
 0x3ab   : > { %v1738_v56 = vsel %vm893_vm6, %v1733_v40, %v1735_v54  ;;  %v1739_v57 = vsel %vm893_vm6, %v1735_v54, %v1737_v55  ;;  %1811 = vmatprep.mubr.f32.mxu1 %v2624_v2  ;;  %1631 = vmatprep.mubr.f32.mxu0 %v2624_v2 }
 0x3ac   : > { %2213 = vmatprep.subr.msk.mxu1 %vm369_vm2, %v1739_v57 }
 0x3ad   : > { %2214 = vmatpush1.msk.msra.mxu1 %vm369_vm2, %v1738_v56 }
 0x3ae   : > { %v1555_v59 = vpop.permute.xlu0 %1554  ;;  %v1557_v60 = vpop.permute.xlu1 %1556  ;;  %2215 = vmatmul.mubr.msk.f32.vlgmr.msra.gmra.mrb[4].mxu1 %vm365_vm3, %v1731_v58 }
 0x3af   : > { %v1558_v61 = vsel %vm711_vm7, %v1553_v41, %v1555_v59  ;;  %v1559_v62 = vsel %vm711_vm7, %v1555_v59, %v1557_v60  ;;  %1897 = vmatprep.mubr.f32.mxu1 %v2624_v2 }
 0x3b0   : > { %2207 = vmatprep.subr.msk.mxu0 %vm369_vm2, %v1559_v62 }
 0x3b1   : > { %2208 = vmatpush1.msk.msra.mxu0 %vm369_vm2, %v1558_v61 }
 0x3b2   : > { %v1821_v1 = vpop.permute.xlu0 %1820  ;;  %v1823_v3 = vpop.permute.xlu1 %1822  ;;  %2209 = vmatmul.mubr.msk.f32.vlgmr.msra.gmra.mrb[4].mxu0 %vm365_vm3, %v1463_v63 }
 0x3b3   : > { %v1824_v6 = vsel %vm980_vm8, %v1819_v42, %v1821_v1  ;;  %v1825_v7 = vsel %vm980_vm8, %v1821_v1, %v1823_v3  ;;  %1719 = vmatprep.mubr.f32.mxu0 %v2624_v2 }
 0x3b4   : > { %2216 = vmatprep.subr.msk.mxu1 %vm369_vm2, %v1825_v7 }
 0x3b5   : > { %2217 = vmatpush1.msk.msra.mxu1 %vm369_vm2, %v1824_v6 }
 0x3b6   : > { %v1643_v9 = vpop.permute.xlu0 %1642  ;;  %v1645_v10 = vpop.permute.xlu1 %1644  ;;  %2218 = vmatmul.mubr.msk.f32.vlgmr.msra.gmra.mrb[4].mxu1 %vm365_vm3, %v1729_v8 }
 0x3b7   : > { %v1647_v11 = vsel %vm800_vm9, %v1643_v9, %v1645_v10  ;;  %1985 = vmatprep.mubr.f32.mxu1 %v2624_v2 }
 0x3b8   : > { %2210 = vmatprep.subr.msk.mxu0 %vm369_vm2, %v1647_v11 }
 0x3ba   : > { %v1909_v12 = vpop.permute.xlu0 %1908  ;;  %v1911_v15 = vpop.permute.xlu1 %1910 }
 0x3bb   : > { %v1913_v16 = vsel %vm1069_vm10, %v1909_v12, %v1911_v15 }
 0x3bc   : > { %2219 = vmatprep.subr.msk.mxu1 %vm369_vm2, %v1913_v16 }
 0x3be   : > { %v1641_v17 = vpop.permute.xlu0 %1640  ;;  %v1907_v18 = vpop.permute.xlu1 %1906 }
 0x3bf   : > { %v1646_v21 = vsel %vm800_vm9, %v1641_v17, %v1643_v9  ;;  %v1912_v22 = vsel %vm1069_vm10, %v1907_v18, %v1909_v12 }
 0x3c0   : > { %2211 = vmatpush1.msk.msra.mxu0 %vm369_vm2, %v1646_v21  ;;  %2220 = vmatpush1.msk.msra.mxu1 %vm369_vm2, %v1912_v22 }
 0x3c1   : > { %2212 = vmatmul.mubr.msk.f32.vlgmr.msra.gmra.mrb[4].mxu0 %vm365_vm3, %v1639_v19  ;;  %2221 = vmatmul.mubr.msk.f32.vlgmr.msra.gmra.mrb[4].mxu1 %vm365_vm3, %v1905_v20 }
 0x3cf   : > { %v2006_v35 = vpop.permute.xlu0 %2005 }
 0x47d   : > { %v1455_v2 = vpop.f32.mrb[2].mxu1 }
 0x47e   : > { %v1457_v23 = vpop.f32.mrb[3].mxu1  ;;  %v1994_v24 = vmul.f32 %v1455_v2, %v3008_v4 }
 0x47f   : > { %v1995_v25 = vmul.f32 %v1457_v23, %v3010_v5 }
 0x494   : > { %v1721_v26 = vpop.f32.mrb[4].mxu0  ;;  %v1987_v27 = vpop.f32.mrb[4].mxu1 }
 0x495   : > { %v1996_v28 = vadd.f32 %v1994_v24, %v1721_v26  ;;  %v1998_v29 = vmul.f32 %v1987_v27, %v3014_v13  ;;  %v1723_v30 = vpop.f32.mrb[5].mxu0  ;;  %v1989_v31 = vpop.f32.mrb[5].mxu1 }
 0x496   : > { %v1997_v32 = vadd.f32 %v1995_v25, %v1723_v30  ;;  %v1999_v33 = vmul.f32 %v1989_v31, %v3016_v14 }
 0x497   : > { %v2000_v34 = vadd.f32 %v1998_v29, %v1996_v28 }
 0x498   : > { %v2001_v36 = vadd.f32 %v1999_v33, %v1997_v32 }
 0x499   : > { %v2008_v37 = vadd.f32 %v2006_v35, %v2000_v34 }
 0x49a   : > { %v2009_v4 = vadd.f32 %v2006_v35, %v2001_v36 }
 0x49c   : > { %v2012_v5 = vcombine.low %v2008_v37, %v2009_v4 }
 0x49e   : > { %v2014_v38 = vadd.f32 %v2012_v5, %v2920_v0 }
 0x4a0   : > { %2015 = vst [vmem:[%s334_s11] sm:$0xff] %v2014_v38 }
 0x4a1   : > { %2548 = shalt.err (!%p2545_p0)
}
 0x4a2   : > { %s2549_s15 = scalar_lea.hbm %s3110_s13, 128  ;;  %s2553_s30 = scalar_lea.hbm %s3160_s6, 256 }
 0x4a3   : > { %p2550_p6 = scmp.ne.s32.totalorder %s3110_s13, %s2549_s15  ;;  %p2554_p8 = scmp.lt.u32.totalorder %s3110_s13, %s3160_s6 }
 0x4a4   : > { %p2555_p5 = scmp.lt.u32.totalorder %s2553_s30, %s2549_s15  ;;  %p2557_p7 = scmp.lt.u32.totalorder %s2549_s15, %s3110_s13 }
 0x4a5   : > { %p2551_p10 = pnand %p2550_p6, %p3179_p4 }
 0x4a6   : > { %p2556_p9 = por %p2555_p5, %p2554_p8 }
 0x4a7   : > { %p2552_p11 = pneg %p2551_p10 }
 0x4a8   : > { %p2558_p12 = por %p2557_p7, %p2556_p9 }
 0x4aa   : > { %p2559_p13 = pnand %p2558_p12, %p2552_p11 }
 0x4ac   : > { %2562 = shalt.err (!%p2559_p13)
}
 0x4ad   : > { %2275 = dma.vmem_to_hbm [thread:$0]  (%p3179_p4), %s3112_s20, 128, %s3110_s13, %s2017_s25  }
 0x4ae PF: > { %s2043_s11 = sand.u32 1, %s2601_s21   ;;  %p3180_p1 = scmp.ne.s32.totalorder %s3170_s19, 0 }
 0x4af   : > { %p3181_p3 = scmp.ge.s32.totalorder %s2613_s24, 2  ;;  %s2044_s14 = scalar_lea.sflag [#allocation4], %s2043_s11 }
 0x4b1   : > { %p2298_p2 = pnand %p3181_p3, %p3180_p1 }
 0x4b3   : > { %2596 = dma.done.wait (!%p2298_p2), %s2044_s14, 128  }
 0x4b4   : > { %2598 = vsyncadd (!%p2298_p2), %s2044_s14, 4294967168  ;;  %p22_p0 = scmp.ge.s32.totalorder %s2828_s7, 4   ;;  %s3182_s21 = smov %s2605_s22 }
 0x4b5   : > { %s3183_s22 = smov %s2609_s23  ;;  %s3184_s23 = smov %s2840_s9 }
 0x4b6   : > { %s3185_s24 = smov %s2828_s7  ;;  %24 = sbr.rel (!%p22_p0) target bundleno = 8 (0x8), region = 126 }
 0x4bd   :  { %2049 = vsyncpa [#allocation3], 1 }
 0x4be   :  { %2051 = vsyncpa [#allocation3 + $0x1], 1 }
 0x4bf   :  { %2052 = vsyncpa [#allocation6], 1 }
 0x4c0   :  { %2053 = vsyncpa [#allocation9], 1 }
 0x4c1   :  { %2054 = vsyncpa [#allocation12], 1 }
 0x4c2   :  { %2055 = vsyncpa [#allocation4], 1 }
 0x4c3   :  { %2057 = vsyncpa [#allocation4 + $0x1], 1 }

</bundles_post_ra>
